<compile_context>
chip_gen: v6e
topology: v6e:2x2x1
jax: 0.10.0
libtpu: 0.0.40
codegen_flags: <defaults>
</compile_context>

<pallas_src>
import jax
import jax.numpy as jnp
from jax import lax
from jax.experimental import pallas as pl
from jax.experimental.pallas import tpu as pltpu


def _cdiv(a, b):
    return (a + b - 1) // b


def _round_up(x, m):
    return _cdiv(x, m) * m


def _choose_tb(batch, tb_max):
    """Tile size: multiple of 8, minimal padding, >=2 tiles for v7x megacore."""
    num_tiles = max(_cdiv(batch, tb_max), 2 if batch >= 16 else 1)
    return _round_up(_cdiv(batch, num_tiles), 8)


# ---------------------------------------------------------------------------
# Fused score: distmult + (algebraically factored) ComplEx, single reduction.
# ---------------------------------------------------------------------------
def _fused_score(s, r, o, d):
    s1, sre, sim = s[:, :d], s[:, d:2 * d], s[:, 2 * d:]
    r1, rre, rim = r[:, :d], r[:, d:2 * d], r[:, 2 * d:]
    o1, ore, oim = o[:, :d], o[:, d:2 * d], o[:, 2 * d:]
    t = (s1 * r1 * o1
         + sre * (rre * ore + rim * oim)
         + sim * (rre * oim - rim * ore))
    # TODO(synk): lane-dense (1, TB) output layout (minor win per review).
    return jnp.sum(t, axis=-1, keepdims=True)


# ---------------------------------------------------------------------------
# Fast path: both tables resident in VMEM, gather via an exact one-hot matmul.
# ---------------------------------------------------------------------------
def _onehot_gather(ids_col, table):
    """ids_col: (TB, 1) int32, table: (N, 3D) -> (TB, 3D) f32 (exact gather)."""
    tb = ids_col.shape[0]
    n = table.shape[0]
    onehot = (lax.broadcasted_iota(jnp.int32, (tb, n), 1) == ids_col)
    return jnp.dot(onehot.astype(table.dtype), table,
                   precision=lax.Precision.HIGHEST,
                   preferred_element_type=jnp.float32)


def _adder_resident_kernel(s_ids, r_ids, o_ids, e_ref, r_ref, out_ref):
    d = e_ref.shape[1] // 3
    e_tab = e_ref[...]
    r_tab = r_ref[...]
    sg = _onehot_gather(s_ids[...], e_tab)
    rg = _onehot_gather(r_ids[...], r_tab)
    og = _onehot_gather(o_ids[...], e_tab)
    out_ref[...] = _fused_score(sg, rg, og, d)


# ---------------------------------------------------------------------------
# Gather path: DMA-gather entity rows from HBM, relation table resident in VMEM.
# ---------------------------------------------------------------------------
def _adder_gather_kernel(s_idx, r_idx, o_idx,     # SMEM (TB,) int32 blocks
                         e_hbm,                   # HBM (pl.ANY) [NE, 3D]
                         r_vmem,                  # VMEM-resident [NR, 3D]
                         out_ref,                 # VMEM (TB, 1) f32
                         sbuf, obuf, rbuf,        # VMEM (TB, 3D) gather scratch
                         sem):                    # DMA semaphores, shape (2,)
    tb = out_ref.shape[0]
    d = sbuf.shape[1] // 3

    # Issue one row-gather DMA per (s, o) index; relation rows are read
    # directly from the resident VMEM table.  Unrolled so several descriptors
    # are issued per loop-control overhead (review #4).
    def _issue(j, carry):
        pltpu.make_async_copy(e_hbm.at[pl.ds(s_idx[j], 1)],
                              sbuf.at[pl.ds(j, 1)], sem.at[0]).start()
        pltpu.make_async_copy(e_hbm.at[pl.ds(o_idx[j], 1)],
                              obuf.at[pl.ds(j, 1)], sem.at[1]).start()
        rbuf[pl.ds(j, 1), :] = r_vmem[pl.ds(r_idx[j], 1), :]
        return carry

    lax.fori_loop(0, tb, _issue, 0, unroll=8)

    # ONE aggregate wait per semaphore (review #1): every copy queued on
    # sem[k] moved exactly one (1, 3D) row, so a single TB-row descriptor's
    # byte count equals the total signalled.  The wrapper guarantees NE >= TB,
    # so the dummy source slice is statically in bounds.
    pltpu.make_async_copy(e_hbm.at[pl.ds(0, tb)], sbuf, sem.at[0]).wait()
    pltpu.make_async_copy(e_hbm.at[pl.ds(0, tb)], obuf, sem.at[1]).wait()

    out_ref[...] = _fused_score(sbuf[...].astype(jnp.float32),
                                rbuf[...].astype(jnp.float32),
                                obuf[...].astype(jnp.float32), d)


# ---------------------------------------------------------------------------
# Wrapper
# ---------------------------------------------------------------------------
_FAST_PATH_TABLE_BYTES = 10 * 1024 * 1024   # resident tables (~2x when buffered)
_FAST_PATH_MAX_ROWS = 4096                  # keep the one-hot gather matmul cheap
_GATHER_SCRATCH_BYTES = 8 * 1024 * 1024     # budget for the 3 (TB, 3D) buffers
_VMEM_LIMIT_BYTES = 32 * 1024 * 1024        # raise v5e/v6e scoped default; < v7x 64 MiB


def adder_scores(E_all, R_all, s, r, o, *, tb_max=512, force_gather=False):
    """E_all: [NE, 3D], R_all: [NR, 3D] (f32 or bf16); s, r, o: int32 [B] -> f32 [B]."""
    ne, d3 = E_all.shape
    nr = R_all.shape[0]
    assert d3 % 3 == 0, "tables must be stacked as [distmult | re | im]"
    itemsize = E_all.dtype.itemsize
    batch = s.shape[0]

    table_bytes = (ne + nr) * d3 * itemsize
    use_resident = (not force_gather
                    and table_bytes <= _FAST_PATH_TABLE_BYTES
                    and max(ne, nr) <= _FAST_PATH_MAX_ROWS)

    tb = _choose_tb(batch, tb_max)
    if not use_resident:
        assert ne >= 8, "gather path needs at least 8 entity rows"
        assert 2 * nr * d3 * itemsize <= _VMEM_LIMIT_BYTES // 2, (
            "relation table too large for VMEM residency")
        # Keep the per-tile gather scratch within budget and keep the
        # aggregate-wait descriptor's (TB, 3D) source slice statically valid.
        max_tb = max(8, min(_GATHER_SCRATCH_BYTES // (3 * d3 * itemsize), ne) // 8 * 8)
        tb = min(tb, max_tb)

    bp = _round_up(batch, tb)
    num_tiles = bp // tb
    pad = bp - batch

    s_p = jnp.pad(s.astype(jnp.int32), (0, pad))
    r_p = jnp.pad(r.astype(jnp.int32), (0, pad))
    o_p = jnp.pad(o.astype(jnp.int32), (0, pad))

    compiler_params = pltpu.CompilerParams(
        dimension_semantics=("parallel",),      # megacore split on v7x
        vmem_limit_bytes=_VMEM_LIMIT_BYTES)
    out_shape = jax.ShapeDtypeStruct((bp, 1), jnp.float32)
    out_spec = pl.BlockSpec((tb, 1), lambda i: (i, 0))

    if use_resident:
        idx_spec = pl.BlockSpec((tb, 1), lambda i: (i, 0))
        cost = pl.CostEstimate(
            flops=int(bp * (12 * (d3 // 3) + 2 * (2 * ne + nr) * d3)),
            transcendentals=0,
            bytes_accessed=int((ne + nr) * d3 * itemsize + 3 * bp * 4 + bp * 4))
        out = pl.pallas_call(
            _adder_resident_kernel,
            grid=(num_tiles,),
            in_specs=[idx_spec, idx_spec, idx_spec,
                      pl.BlockSpec((ne, d3), lambda i: (0, 0)),   # E resident
                      pl.BlockSpec((nr, d3), lambda i: (0, 0))],  # R resident
            out_specs=out_spec,
            out_shape=out_shape,
            compiler_params=compiler_params,
            cost_estimate=cost,
        )(s_p.reshape(bp, 1), r_p.reshape(bp, 1), o_p.reshape(bp, 1),
          E_all, R_all)
    else:
        smem_idx = pl.BlockSpec((tb,), lambda i: (i,),
                                memory_space=pltpu.MemorySpace.SMEM)
        cost = pl.CostEstimate(
            flops=int(12 * bp * (d3 // 3)),
            transcendentals=0,
            bytes_accessed=int(bp * (3 * d3 * itemsize + 3 * 4 + 4)
                               + nr * d3 * itemsize))
        out = pl.pallas_call(
            _adder_gather_kernel,
            grid=(num_tiles,),
            in_specs=[smem_idx, smem_idx, smem_idx,
                      pl.BlockSpec(memory_space=pl.ANY),          # E stays in HBM
                      pl.BlockSpec((nr, d3), lambda i: (0, 0))],  # R resident
            out_specs=out_spec,
            out_shape=out_shape,
            scratch_shapes=[
                pltpu.VMEM((tb, d3), E_all.dtype),   # gathered E_all[s]
                pltpu.VMEM((tb, d3), E_all.dtype),   # gathered E_all[o]
                pltpu.VMEM((tb, d3), R_all.dtype),   # gathered R_all[r]
                pltpu.SemaphoreType.DMA((2,)),
            ],
            compiler_params=compiler_params,
            cost_estimate=cost,
        )(s_p, r_p, o_p, E_all, R_all)

    return out[:batch, 0]


# ---------------------------------------------------------------------------
# Parameters / model wrapper / reference
# ---------------------------------------------------------------------------
def make_params(key, entity_count, relation_count, dim, dtype=jnp.float32):
    """Stacked tables [N, 3*Dp] = [distmult | complex_re | complex_im].

    Dp = dim padded to a multiple of 128 (zero columns do not change scores).
    Pass dtype=jnp.bfloat16 for bf16 storage; kernels upcast to f32."""
    dim_p = _round_up(dim, 128)
    ks = jax.random.split(key, 6)
    scale = 0.1

    def emb(k, n):
        w = scale * jax.random.normal(k, (n, dim), jnp.float32)
        return jnp.pad(w, ((0, 0), (0, dim_p - dim)))

    e1, e2re, e2im = emb(ks[0], entity_count), emb(ks[1], entity_count), emb(ks[2], entity_count)
    r1, r2re, r2im = emb(ks[3], relation_count), emb(ks[4], relation_count), emb(ks[5], relation_count)
    return {
        "E_all": jnp.concatenate([e1, e2re, e2im], axis=1).astype(dtype),
        "R_all": jnp.concatenate([r1, r2re, r2im], axis=1).astype(dtype),
    }


def adder_model_forward(params, s, r, o):
    """adder_model.forward: s, r, o int32 [B] -> f32 [B] scores."""
    return adder_scores(params["E_all"], params["R_all"], s, r, o)


def _reference(params, s, r, o):
    e = params["E_all"].astype(jnp.float32)
    rt = params["R_all"].astype(jnp.float32)
    d = e.shape[1] // 3
    e1, e2re, e2im = e[:, :d], e[:, d:2 * d], e[:, 2 * d:]
    r1, r2re, r2im = rt[:, :d], rt[:, d:2 * d], rt[:, 2 * d:]
    dist = jnp.sum(e1[s] * r1[r] * e1[o], axis=-1)
    cplx = jnp.sum(e2re[s] * r2re[r] * e2re[o] + e2im[s] * r2re[r] * e2im[o]
                   + e2re[s] * r2im[r] * e2im[o] - e2im[s] * r2im[r] * e2re[o],
                   axis=-1)
    return dist + cplx


if __name__ == "__main__":
    entity_count, relation_count, dim = 32, 16, 128
    B = 8

    key = jax.random.PRNGKey(0)
    pkey, skey, rkey, okey = jax.random.split(key, 4)
    params = make_params(pkey, entity_count, relation_count, dim)

    s = jax.random.randint(skey, (B,), 0, entity_count, dtype=jnp.int32)
    r = jax.random.randint(rkey, (B,), 0, relation_count, dtype=jnp.int32)
    o = jax.random.randint(okey, (B,), 0, entity_count, dtype=jnp.int32)

    ref = _reference(params, s, r, o)

    # Fast (resident) path: tables live in VMEM, one-hot MXU gather.
    fast = jax.jit(adder_model_forward)
    out_fast = jax.block_until_ready(fast(params, s, r, o))
    assert out_fast.shape == (B,)
    assert jnp.allclose(out_fast, ref, atol=1e-3, rtol=1e-3)

    # Gather path (forced): per-row DMA gather of entity rows from HBM with a
    # single aggregate wait per semaphore + resident relation table.
    gather = jax.jit(lambda E, R, a, b, c: adder_scores(E, R, a, b, c,
                                                        force_gather=True))
    out_gather = jax.block_until_ready(
        gather(params["E_all"], params["R_all"], s, r, o))
    assert jnp.allclose(out_gather, ref, atol=1e-3, rtol=1e-3)

    print("KERNEL_OK")
</pallas_src>

<mosaic_0001>
module attributes {stable_mosaic.version = 11 : i64} {
  func.func @_adder_resident_kernel(%arg0: i32, %arg1: memref<8x1xi32, #tpu.memory_space<vmem>>, %arg2: memref<8x1xi32, #tpu.memory_space<vmem>>, %arg3: memref<8x1xi32, #tpu.memory_space<vmem>>, %arg4: memref<32x384xf32, #tpu.memory_space<vmem>>, %arg5: memref<16x384xf32, #tpu.memory_space<vmem>>, %arg6: memref<8x1xf32, #tpu.memory_space<vmem>>) attributes {dimension_semantics = [#tpu.dimension_semantics<parallel>], iteration_bounds = array<i64: 1>, scalar_prefetch = 0 : i64, scratch_operands = 0 : i64, tpu.core_type = #tpu.core_type<tc>, window_params = [{transform_indices = @transform_0, window_bounds = array<i64: 8, 1>}, {transform_indices = @transform_1, window_bounds = array<i64: 8, 1>}, {transform_indices = @transform_2, window_bounds = array<i64: 8, 1>}, {pipeline_mode = #tpu.pipeline_mode<synchronous>, transform_indices = @transform_3, window_bounds = array<i64: 32, 384>}, {pipeline_mode = #tpu.pipeline_mode<synchronous>, transform_indices = @transform_4, window_bounds = array<i64: 16, 384>}, {transform_indices = @transform_5, window_bounds = array<i64: 8, 1>}]} {
    %c0 = arith.constant 0 : index
    %c0_0 = arith.constant 0 : index
    %0 = vector.load %arg4[%c0, %c0_0] : memref<32x384xf32, #tpu.memory_space<vmem>>, vector<32x384xf32>
    %c0_1 = arith.constant 0 : index
    %c0_2 = arith.constant 0 : index
    %1 = vector.load %arg5[%c0_1, %c0_2] : memref<16x384xf32, #tpu.memory_space<vmem>>, vector<16x384xf32>
    %c0_3 = arith.constant 0 : index
    %c0_4 = arith.constant 0 : index
    %2 = vector.load %arg1[%c0_3, %c0_4] : memref<8x1xi32, #tpu.memory_space<vmem>>, vector<8x1xi32>
    %3 = tpu.iota {dimensions = array<i32: 1>} : vector<8x32xi32>
    %4 = vector.broadcast %2 : vector<8x1xi32> to vector<8x32xi32>
    %5 = arith.cmpi eq, %3, %4 : vector<8x32xi32>
    %6 = arith.extui %5 : vector<8x32xi1> to vector<8x32xi32>
    %7 = arith.sitofp %6 : vector<8x32xi32> to vector<8x32xf32>
    %cst = arith.constant dense<0.000000e+00> : vector<8x384xf32>
    %8 = tpu.matmul %7, %0, %cst {dimension_numbers = #tpu.dot_dimension_numbers<[1], [0], [0], [1], [0, 0, 1, 1], [], []>, precision = #tpu.contract_precision<fp32>} : vector<8x32xf32>, vector<32x384xf32>, vector<8x384xf32> -> vector<8x384xf32>
    %c0_5 = arith.constant 0 : index
    %c0_6 = arith.constant 0 : index
    %9 = vector.load %arg2[%c0_5, %c0_6] : memref<8x1xi32, #tpu.memory_space<vmem>>, vector<8x1xi32>
    %10 = tpu.iota {dimensions = array<i32: 1>} : vector<8x16xi32>
    %11 = vector.broadcast %9 : vector<8x1xi32> to vector<8x16xi32>
    %12 = arith.cmpi eq, %10, %11 : vector<8x16xi32>
    %13 = arith.extui %12 : vector<8x16xi1> to vector<8x16xi32>
    %14 = arith.sitofp %13 : vector<8x16xi32> to vector<8x16xf32>
    %cst_7 = arith.constant dense<0.000000e+00> : vector<8x384xf32>
    %15 = tpu.matmul %14, %1, %cst_7 {dimension_numbers = #tpu.dot_dimension_numbers<[1], [0], [0], [1], [0, 0, 1, 1], [], []>, precision = #tpu.contract_precision<fp32>} : vector<8x16xf32>, vector<16x384xf32>, vector<8x384xf32> -> vector<8x384xf32>
    %c0_8 = arith.constant 0 : index
    %c0_9 = arith.constant 0 : index
    %16 = vector.load %arg3[%c0_8, %c0_9] : memref<8x1xi32, #tpu.memory_space<vmem>>, vector<8x1xi32>
    %17 = tpu.iota {dimensions = array<i32: 1>} : vector<8x32xi32>
    %18 = vector.broadcast %16 : vector<8x1xi32> to vector<8x32xi32>
    %19 = arith.cmpi eq, %17, %18 : vector<8x32xi32>
    %20 = arith.extui %19 : vector<8x32xi1> to vector<8x32xi32>
    %21 = arith.sitofp %20 : vector<8x32xi32> to vector<8x32xf32>
    %cst_10 = arith.constant dense<0.000000e+00> : vector<8x384xf32>
    %22 = tpu.matmul %21, %0, %cst_10 {dimension_numbers = #tpu.dot_dimension_numbers<[1], [0], [0], [1], [0, 0, 1, 1], [], []>, precision = #tpu.contract_precision<fp32>} : vector<8x32xf32>, vector<32x384xf32>, vector<8x384xf32> -> vector<8x384xf32>
    %23 = vector.extract_strided_slice %8 {offsets = [0, 0], sizes = [8, 128], strides = [1, 1]} : vector<8x384xf32> to vector<8x128xf32>
    %24 = vector.extract_strided_slice %8 {offsets = [0, 128], sizes = [8, 128], strides = [1, 1]} : vector<8x384xf32> to vector<8x128xf32>
    %25 = vector.extract_strided_slice %8 {offsets = [0, 256], sizes = [8, 128], strides = [1, 1]} : vector<8x384xf32> to vector<8x128xf32>
    %26 = vector.extract_strided_slice %15 {offsets = [0, 0], sizes = [8, 128], strides = [1, 1]} : vector<8x384xf32> to vector<8x128xf32>
    %27 = vector.extract_strided_slice %15 {offsets = [0, 128], sizes = [8, 128], strides = [1, 1]} : vector<8x384xf32> to vector<8x128xf32>
    %28 = vector.extract_strided_slice %15 {offsets = [0, 256], sizes = [8, 128], strides = [1, 1]} : vector<8x384xf32> to vector<8x128xf32>
    %29 = vector.extract_strided_slice %22 {offsets = [0, 0], sizes = [8, 128], strides = [1, 1]} : vector<8x384xf32> to vector<8x128xf32>
    %30 = vector.extract_strided_slice %22 {offsets = [0, 128], sizes = [8, 128], strides = [1, 1]} : vector<8x384xf32> to vector<8x128xf32>
    %31 = vector.extract_strided_slice %22 {offsets = [0, 256], sizes = [8, 128], strides = [1, 1]} : vector<8x384xf32> to vector<8x128xf32>
    %32 = arith.mulf %23, %26 : vector<8x128xf32>
    %33 = arith.mulf %32, %29 : vector<8x128xf32>
    %34 = arith.mulf %27, %30 : vector<8x128xf32>
    %35 = arith.mulf %28, %31 : vector<8x128xf32>
    %36 = arith.addf %34, %35 : vector<8x128xf32>
    %37 = arith.mulf %24, %36 : vector<8x128xf32>
    %38 = arith.addf %33, %37 : vector<8x128xf32>
    %39 = arith.mulf %27, %31 : vector<8x128xf32>
    %40 = arith.mulf %28, %30 : vector<8x128xf32>
    %41 = arith.subf %39, %40 : vector<8x128xf32>
    %42 = arith.mulf %25, %41 : vector<8x128xf32>
    %43 = arith.addf %38, %42 : vector<8x128xf32>
    %cst_11 = arith.constant dense<0.000000e+00> : vector<8xf32>
    %44 = vector.multi_reduction <add>, %43, %cst_11 [1] : vector<8x128xf32> to vector<8xf32>
    %45 = vector.shape_cast %44 : vector<8xf32> to vector<8x1xf32>
    %c0_12 = arith.constant 0 : index
    %c0_13 = arith.constant 0 : index
    %46 = vector.load %arg6[%c0_12, %c0_13] : memref<8x1xf32, #tpu.memory_space<vmem>>, vector<8x1xf32>
    tpu.vector_store %arg6[%c0_12, %c0_13], %45 {strides = array<i32>} : memref<8x1xf32, #tpu.memory_space<vmem>>, vector<8x1xf32>,
    return
  }
  func.func @transform_0(%arg0: i32) -> (i32, i32) {
    %c0_i32 = arith.constant 0 : i32
    %c0_i32_0 = arith.constant 0 : i32
    return %arg0, %c0_i32 : i32, i32
  }
  func.func @transform_1(%arg0: i32) -> (i32, i32) {
    %c0_i32 = arith.constant 0 : i32
    %c0_i32_0 = arith.constant 0 : i32
    return %arg0, %c0_i32 : i32, i32
  }
  func.func @transform_2(%arg0: i32) -> (i32, i32) {
    %c0_i32 = arith.constant 0 : i32
    %c0_i32_0 = arith.constant 0 : i32
    return %arg0, %c0_i32 : i32, i32
  }
  func.func @transform_3(%arg0: i32) -> (i32, i32) {
    %c0_i32 = arith.constant 0 : i32
    %c0_i32_0 = arith.constant 0 : i32
    %c0_i32_1 = arith.constant 0 : i32
    return %c0_i32, %c0_i32_0 : i32, i32
  }
  func.func @transform_4(%arg0: i32) -> (i32, i32) {
    %c0_i32 = arith.constant 0 : i32
    %c0_i32_0 = arith.constant 0 : i32
    %c0_i32_1 = arith.constant 0 : i32
    return %c0_i32, %c0_i32_0 : i32, i32
  }
  func.func @transform_5(%arg0: i32) -> (i32, i32) {
    %c0_i32 = arith.constant 0 : i32
    %c0_i32_0 = arith.constant 0 : i32
    return %arg0, %c0_i32 : i32, i32
  }
}

</mosaic_0001>

<bundles_post_ra>
// kernel: adder_model_forward.1
= control target key start
LH: loop header
LB: loop body
LE: loop exit
PB: predicated region body
PF: predicated region fallthrough
CT: control target
= control target key end

     0   :  { %10 = vsyncpa [#allocation3], 0  ;;  %s4099_s0 = inlined_call_operand.vmem [shape: s32[8,1], index: 0, kind: input, shape index: {}]   ;;  %s4100_s1 = inlined_call_operand.vmem [shape: s32[8,1], index: 1, kind: input, shape index: {}]   ;;  %s4101_s2 = inlined_call_operand.vmem [shape: s32[8,1], index: 2, kind: input, shape index: {}]   ;;  %s4102_s3 = inlined_call_operand.hbm [shape: f32[32,384], index: 3, kind: input, shape index: {}]   ;;  %s4103_s4 = inlined_call_operand.hbm [shape: f32[16,384], index: 4, kind: input, shape index: {}]   ;;  %s4104_s5 = inlined_call_operand.vmem [shape: f32[8,1], index: 5, kind: output, shape index: {}]  }
   0x1   :  { %11 = vsyncpa [#allocation5], 0  ;;  %s3454_s18 = smov [#allocation2]  }
   0x2   :  { %s23_s19 = sshll.u32 %s3454_s18, 4  ;;  %s24_s19 = int_to_ptr.vmem [resolvable:$true] %s23_s19 }
   0x3   :  { %s3418_s20 = scalar_lea.vmem %s24_s19, 1536  ;;  %p3423_p1 = scmp.lt.s32.totalorder %s24_s19, %s24_s19 }
   0x4   :  { %p3419_p0 = scmp.ne.s32.totalorder %s24_s19, %s3418_s20  ;;  %p3424_p2 = scmp.lt.s32.totalorder %s3418_s20, %s3418_s20 }
   0x6   :  { %p3425_p3 = por %p3424_p2, %p3423_p1 }
   0x8   :  { %p3426_p4 = pnand %p3425_p3, %p3419_p0 }
   0xa   :  { %3429 = shalt.err (!%p3426_p4)
}
   0xb   :  { %s3455_s21 = smov 384   ;;  %s3456_s22 = smov 24  }
   0xc   :  { %29 = dma.hbm_to_vmem [thread:$0]  %s4102_s3, 1536, %s24_s19, [#allocation3], %s3455_s21, %s3455_s21, %s3456_s22  }
   0xd   :  { %s3457_s25 = smov [#allocation4]  }
   0xe   :  { %s35_s26 = sshll.u32 %s3457_s25, 4  ;;  %s36_s26 = int_to_ptr.vmem [resolvable:$true] %s35_s26 }
   0xf   :  { %s3438_s27 = scalar_lea.vmem %s36_s26, 768  ;;  %p3443_p6 = scmp.lt.s32.totalorder %s36_s26, %s36_s26 }
  0x10   :  { %p3439_p5 = scmp.ne.s32.totalorder %s36_s26, %s3438_s27  ;;  %p3444_p7 = scmp.lt.s32.totalorder %s3438_s27, %s3438_s27 }
  0x12   :  { %p3445_p8 = por %p3444_p7, %p3443_p6 }
  0x14   :  { %p3446_p9 = pnand %p3445_p8, %p3439_p5 }
  0x16   :  { %3449 = shalt.err (!%p3446_p9)
}
  0x17   :  { %41 = dma.hbm_to_vmem [thread:$0]  %s4103_s4, 768, %s36_s26, [#allocation5], %s3455_s21, %s3455_s21, %s3456_s22  }
  0x18   :  { %3450 = dma.done.wait [#allocation3], 1536  }
  0x19   :  { %3451 = vsyncadd [#allocation3], 4294965760 }
  0x1a   :  { %3452 = dma.done.wait [#allocation5], 768  }
  0x1b   :  { %3453 = vsyncadd [#allocation5], 4294966528  ;;  %v3458_v0 = vmov 0   ;;  %v3459_v1 = vmov 0.0   ;;  %v66_v2 = vld [vmem:[%s4099_s0] sm:$0xff]  ;;  %v58_v5 = vld [vmem:[#allocation2 + $0x50] sm:$0xff]  ;;  %v67_v53 = vlaneseq }
  0x1c   :  { %3408 = vset.pattern.permute.xlu0 %v3458_v0  ;;  %3409 = vset.pattern.permute.xlu1 %v3458_v0  ;;  %v1107_v3 = vld [vmem:[%s4100_s1] sm:$0xff]  ;;  %v57_v6 = vld [vmem:[#allocation2 + $0x48] sm:$0xff]  ;;  %v55_v7 = vld [vmem:[#allocation2 + $0x38] sm:$0xff]  ;;  %v3508_v8 = vand.u32 4294901760, %v58_v5  ;;  %vm75_vm0 = vcmask 261120   ;;  %vm3460_vm2 = vmmov 0  }
  0x1d   :  { %267 = vmatprep.mubr.f32.mxu1 %v3459_v1  ;;  %151 = vmatprep.mubr.f32.mxu0 %v3459_v1  ;;  %v2068_v4 = vld [vmem:[%s4101_s2] sm:$0xff]  ;;  %v3510_v9 = vand.u32 4294901760, %v57_v6  ;;  %v3512_v10 = vand.u32 4294901760, %v55_v7  ;;  %v54_v11 = vld [vmem:[#allocation2 + $0x30] sm:$0xff]  ;;  %v51_v13 = vld [vmem:[#allocation2 + $0x18] sm:$0xff]  ;;  %v3622_v54 = vand.u32 127, %v67_v53 }
  0x1e   :  { %70 = vperm.xlu0 %3408, %v66_v2   ;;  %2070 = vperm.xlu1 %3409, %v2068_v4   ;;  %v52_v12 = vld [vmem:[#allocation2 + $0x20] sm:$0xff]  ;;  %v3514_v14 = vand.u32 4294901760, %v54_v11  ;;  %v3518_v16 = vand.u32 4294901760, %v51_v13  ;;  %v49_v17 = vld [vmem:[#allocation2 + $0x8] sm:$0xff]  ;;  %v3521_v19 = vsub.f32 %v58_v5, %v3508_v8  ;;  %v59_v55 = vld [vmem:[#allocation2 + $0x58] sm:$0xff]  ;;  %vm1114_vm4 = vcmask 130048  }
  0x1f   :  { %v3516_v15 = vand.u32 4294901760, %v52_v12  ;;  %v48_v18 = vld [vmem:[#allocation2] sm:$0xff]  ;;  %v3524_v20 = vsub.f32 %v57_v6, %v3510_v9  ;;  %v3527_v21 = vsub.f32 %v55_v7, %v3512_v10  ;;  %v3529_v22 = vand.u32 4294901760, %v49_v17  ;;  %104 = vmatprep.subr.mxu0 %v3508_v8  ;;  %v53_v61 = vld [vmem:[#allocation2 + $0x28] sm:$0xff]  ;;  %v50_v0 = vld [vmem:[#allocation2 + $0x10] sm:$0xff] }
  0x20   :  { %v3533_v23 = vsub.f32 %v54_v11, %v3514_v14  ;;  %v3539_v25 = vsub.f32 %v51_v13, %v3518_v16  ;;  %v3541_v26 = vand.u32 4294901760, %v48_v18  ;;  %106 = vmatpush1.msra.mxu0 %v3510_v9  ;;  %v3545_v27 = vand.u32 4294901760, %v3521_v19  ;;  %v56_v57 = vld [vmem:[#allocation2 + $0x40] sm:$0xff] }
  0x21   :  { %v3536_v24 = vsub.f32 %v52_v12, %v3516_v15  ;;  %v3548_v28 = vand.u32 4294901760, %v3524_v20  ;;  %v3551_v29 = vand.u32 4294901760, %v3527_v21  ;;  %v3554_v30 = vsub.f32 %v49_v17, %v3529_v22  ;;  %108 = vmatprep.subr.mxu0 %v3512_v10 }
  0x22   :  { %1109 = vperm.xlu0 %3408, %v1107_v3   ;;  %v3558_v31 = vand.u32 4294901760, %v3533_v23  ;;  %v3564_v33 = vand.u32 4294901760, %v3539_v25  ;;  %v3567_v34 = vsub.f32 %v48_v18, %v3541_v26  ;;  %110 = vmatpush1.msra.mxu0 %v3514_v14  ;;  %v190_v35 = vsub.f32 %v3521_v19, %v3545_v27 }
  0x23   :  { %v3561_v32 = vand.u32 4294901760, %v3536_v24  ;;  %v196_v36 = vsub.f32 %v3524_v20, %v3548_v28  ;;  %v202_v37 = vsub.f32 %v3527_v21, %v3551_v29  ;;  %v3577_v38 = vand.u32 4294901760, %v3554_v30  ;;  %112 = vmatprep.subr.mxu0 %v3516_v15 }
  0x24   :  { %v208_v39 = vsub.f32 %v3533_v23, %v3558_v31  ;;  %v220_v41 = vsub.f32 %v3539_v25, %v3564_v33  ;;  %v3587_v42 = vand.u32 4294901760, %v3567_v34  ;;  %114 = vmatpush1.msra.mxu0 %v3518_v16  ;;  %v3590_v43 = vand.u32 4294901760, %v190_v35 }
  0x25   :  { %v214_v40 = vsub.f32 %v3536_v24, %v3561_v32  ;;  %v3592_v44 = vand.u32 4294901760, %v196_v36  ;;  %v3594_v45 = vand.u32 4294901760, %v202_v37  ;;  %v226_v46 = vsub.f32 %v3554_v30, %v3577_v38  ;;  %116 = vmatprep.subr.mxu0 %v3529_v22 }
  0x26   :  { %4116 = vst [vmem:[#allocation8_spill] sm:$0xff] %v3587_v42  ;;  %v3599_v47 = vand.u32 4294901760, %v208_v39  ;;  %v232_v48 = vsub.f32 %v3567_v34, %v3587_v42  ;;  %118 = vmatpush1.msra.mxu0 %v3541_v26  ;;  %192 = vmatprep.subr.mxu1 %v3590_v43  ;;  %v3609_v50 = vand.u32 4294901760, %v220_v41  ;;  %v3628_v59 = vand.u32 4294901760, %v59_v55 }
  0x27   :  { %v3605_v49 = vand.u32 4294901760, %v214_v40  ;;  %301 = vmatprep.subr.mxu0 %v3521_v19  ;;  %198 = vmatpush1.msra.mxu1 %v3592_v44  ;;  %v3612_v51 = vand.u32 4294901760, %v226_v46  ;;  %v3638_v63 = vand.u32 4294901760, %v56_v57  ;;  %v3648_v4 = vand.u32 4294901760, %v53_v61 }
  0x28   :  { %204 = vmatprep.subr.mxu1 %v3594_v45  ;;  %v3615_v52 = vand.u32 4294901760, %v232_v48  ;;  %4117 = vst [vmem:[#allocation9_spill] sm:$0xff] %v3628_v59  ;;  %v3646_v3 = vsub.f32 %v59_v55, %v3628_v59  ;;  %v3657_v7 = vand.u32 4294901760, %v50_v0  ;;  %vm3120_vm6 = vcmask 7168  }
  0x29   :  { %210 = vmatpush1.msra.mxu1 %v3599_v47  ;;  %4118 = vst [vmem:[#allocation10_spill] sm:$0xff] %v3638_v63  ;;  %v3655_v6 = vsub.f32 %v56_v57, %v3638_v63  ;;  %v3667_v13 = vsub.f32 %v53_v61, %v3648_v4  ;;  %v63_v57 = vld [vmem:[#allocation4 + $0x18] sm:$0xff] }
  0x2a   :  { %216 = vmatprep.subr.mxu1 %v3605_v49  ;;  %4119 = vst [vmem:[#allocation11_spill] sm:$0xff] %v3646_v3  ;;  %4121 = vst [vmem:[#allocation13_spill] sm:$0xff] %v3657_v7  ;;  %v3664_v12 = vand.u32 4294901760, %v3646_v3  ;;  %v3677_v18 = vsub.f32 %v50_v0, %v3657_v7  ;;  %v60_v0 = vld [vmem:[#allocation4] sm:$0xff] }
  0x2b   :  { %222 = vmatpush1.msra.mxu1 %v3609_v50  ;;  %4120 = vst [vmem:[#allocation12_spill] sm:$0xff] %v3655_v6  ;;  %4122 = vst [vmem:[#allocation14_spill] sm:$0xff] %v3667_v13  ;;  %v3674_v17 = vand.u32 4294901760, %v3655_v6  ;;  %v3686_v36 = vand.u32 4294901760, %v3667_v13 }
  0x2c   :  { %228 = vmatprep.subr.mxu1 %v3612_v51  ;;  %v729_v35 = vsub.f32 %v3646_v3, %v3664_v12  ;;  %v3695_v39 = vand.u32 4294901760, %v3677_v18 }
  0x2d   :  { %234 = vmatpush1.msra.mxu1 %v3615_v52  ;;  %v736_v37 = vsub.f32 %v3655_v6, %v3674_v17  ;;  %v743_v41 = vsub.f32 %v3667_v13, %v3686_v36 }
  0x2e   :  { %389 = vmatprep.subr.mxu1 %v3508_v8  ;;  %v3701_v40 = vand.u32 4294901760, %v729_v35  ;;  %v750_v48 = vsub.f32 %v3677_v18, %v3695_v39 }
  0x2f   :  { %v3710_v46 = vand.u32 4294901760, %v736_v37  ;;  %v3718_v53 = vand.u32 4294901760, %v743_v41  ;;  %v3755_v37 = vand.u32 4294901760, %v60_v0 }
  0x30   :  { %v3724_v55 = vand.u32 4294901760, %v750_v48 }
  0x32   :  { %4123 = vst [vmem:[#allocation15_spill] sm:$0xff] %v3724_v55 }
  0x99   :  { %v71_v56 = vpop.permute.xlu0 %70 }
  0x9a   :  { %vm72_vm1 = vcmp.eq.s32.totalorder %v3622_v54, %v71_v56  ;;  %v64_v56 = vld [vmem:[#allocation4 + $0x20] sm:$0xff] }
  0x9b   :  { %v3626_v58 = vsel %vm72_vm1, 1.0, %v3459_v1  ;;  %v3743_v61 = vand.u32 4294901760, %v64_v56 }
  0x9c   :  { %v77_v60 = vsel %vm75_vm0, %v3626_v58, 0  ;;  %3129 = vmatmul.mubr.msk.f32.vlgmr.msra.gmra.mxu1 %vm75_vm0, %v3626_v58 }
  0x9d   :  { %v3634_v62 = vsub.f32 %v77_v60, %v77_v60  ;;  %391 = vmatpush1.msra.mxu1 %v3510_v9  ;;  %436 = vmatprep.mubr.f32.mxu1 %v3459_v1  ;;  %v61_v60 = vld [vmem:[#allocation4 + $0x8] sm:$0xff]  ;;  %v3760_v41 = vsub.f32 %v64_v56, %v3743_v61  ;;  %v3775_v56 = vsub.f32 %v60_v0, %v3755_v37 }
  0x9e   :  { %393 = vmatprep.subr.mxu1 %v3512_v10  ;;  %v3751_v35 = vand.u32 4294901760, %v61_v60 }
  0x9f   :  { %395 = vmatpush1.msra.mxu1 %v3514_v14  ;;  %v3643_v2 = vand.u32 4294901760, %v3634_v62 }
  0xa0   :  { %397 = vmatprep.subr.mxu1 %v3516_v15 }
  0xa1   :  { %399 = vmatpush1.msra.mxu1 %v3518_v16  ;;  %v155_v5 = vsub.f32 %v3634_v62, %v3643_v2 }
  0xa2   :  { %401 = vmatprep.subr.mxu1 %v3529_v22 }
  0xa3   :  { %403 = vmatpush1.msra.mxu1 %v3541_v26  ;;  %v3661_v11 = vand.u32 4294901760, %v155_v5  ;;  %v3747_v5 = vand.u32 4294901760, %v63_v57 }
  0xa4   :  { %440 = vmatmul.mubr.f32.vlgmr.msra.gmra.mxu1 %v3643_v2  ;;  %567 = vmatprep.subr.mxu1 %v3508_v8 }
  0xa5   :  { %569 = vmatpush1.msra.mxu1 %v3510_v9  ;;  %157 = vmatmul.mubr.f32.vlgmr.msra.gmra.mxu0 %v3661_v11  ;;  %v3765_v48 = vsub.f32 %v63_v57, %v3747_v5 }
  0xa6   :  { %304 = vmatpush1.msra.mxu0 %v3524_v20  ;;  %571 = vmatprep.subr.mxu1 %v3512_v10 }
  0xa7   :  { %307 = vmatprep.subr.mxu0 %v3527_v21  ;;  %573 = vmatpush1.msra.mxu1 %v3514_v14 }
  0xa8   :  { %310 = vmatpush1.msra.mxu0 %v3533_v23  ;;  %575 = vmatprep.subr.mxu1 %v3516_v15 }
  0xa9   :  { %313 = vmatprep.subr.mxu0 %v3536_v24  ;;  %577 = vmatpush1.msra.mxu1 %v3518_v16 }
  0xaa   :  { %316 = vmatpush1.msra.mxu0 %v3539_v25  ;;  %579 = vmatprep.subr.mxu1 %v3529_v22 }
  0xab   :  { %319 = vmatprep.subr.mxu0 %v3554_v30  ;;  %581 = vmatpush1.msra.mxu1 %v3541_v26 }
  0xac   :  { %614 = vmatprep.mubr.f32.mxu1 %v3459_v1  ;;  %322 = vmatpush1.msra.mxu0 %v3567_v34 }
  0xad   :  { %355 = vmatprep.mubr.f32.mxu0 %v3459_v1  ;;  %3131 = vmatmul.mubr.msk.f32.vlgmr.msra.gmra.mxu1 %vm75_vm0, %v3626_v58 }
  0xae   :  { %3238 = vmatprep.subr.mxu1 %v3459_v1  ;;  %358 = vmatmul.mubr.f32.vlgmr.msra.gmra.mxu0 %v3634_v62 }
  0xaf   :  { %473 = vmatprep.subr.mxu0 %v3545_v27  ;;  %3239 = vmatpush3.msra.mxu1 %v3701_v40 }
  0xb0   :  { %477 = vmatpush1.msra.mxu0 %v3548_v28  ;;  %3240 = vmatprep.subr.mxu1 %v3459_v1 }
  0xb1   :  { %481 = vmatprep.subr.mxu0 %v3551_v29  ;;  %3241 = vmatpush3.msra.mxu1 %v3710_v46 }
  0xb2   :  { %485 = vmatpush1.msra.mxu0 %v3558_v31  ;;  %3242 = vmatprep.subr.mxu1 %v3459_v1 }
  0xb3   :  { %489 = vmatprep.subr.mxu0 %v3561_v32  ;;  %3243 = vmatpush3.msra.mxu1 %v3718_v53 }
  0xb4   :  { %493 = vmatpush1.msra.mxu0 %v3564_v33  ;;  %3244 = vmatprep.subr.mxu1 %v3459_v1 }
  0xb5   :  { %497 = vmatprep.subr.mxu0 %v3577_v38  ;;  %3245 = vmatpush3.msra.mxu1 %v3724_v55  ;;  %v1110_v55 = vpop.permute.xlu0 %1109 }
  0xb6   :  { %3246 = vmatprep.mubr.msk.f32.mxu1 %vm3460_vm2, %v3459_v1  ;;  %501 = vmatpush1.msra.mxu0 %v3587_v42  ;;  %v3770_v42 = vsub.f32 %v61_v60, %v3751_v35  ;;  %vm1111_vm3 = vcmp.eq.s32.totalorder %v3622_v54, %v1110_v55 }
  0xb7   :  { %534 = vmatprep.mubr.f32.mxu0 %v3459_v1  ;;  %3247 = vmatmul.mubr.msk.f32.vlgmr.msra.gmra.mxu1 %vm75_vm0, %v3626_v58 }
  0xb8   :  { %3260 = vmatprep.subr.mxu1 %v3459_v1  ;;  %3130 = vmatmul.mubr.msk.f32.vlgmr.msra.gmra.mxu0 %vm75_vm0, %v3626_v58  ;;  %v4126_v57 = vand.u32 4294901760, %v3770_v42 }
  0xb9   :  { %3227 = vmatprep.subr.mxu0 %v3459_v1  ;;  %3261 = vmatpush3.msra.mxu1 %v3628_v59 }
  0xba   :  { %3228 = vmatpush3.msra.mxu0 %v3628_v59  ;;  %3262 = vmatprep.subr.mxu1 %v3459_v1 }
  0xbb   :  { %3229 = vmatprep.subr.mxu0 %v3459_v1  ;;  %3263 = vmatpush3.msra.mxu1 %v3638_v63 }
  0xbc   :  { %3230 = vmatpush3.msra.mxu0 %v3638_v63  ;;  %3264 = vmatprep.subr.mxu1 %v3459_v1 }
  0xbd   :  { %3231 = vmatprep.subr.mxu0 %v3459_v1  ;;  %3265 = vmatpush3.msra.mxu1 %v3648_v4 }
  0xbe   :  { %3232 = vmatpush3.msra.mxu0 %v3648_v4  ;;  %3266 = vmatprep.subr.mxu1 %v3459_v1 }
  0xbf   :  { %3233 = vmatprep.subr.mxu0 %v3459_v1  ;;  %3267 = vmatpush3.msra.mxu1 %v3657_v7 }
  0xc0   :  { %3268 = vmatprep.mubr.msk.f32.mxu1 %vm3460_vm2, %v3459_v1  ;;  %3234 = vmatpush3.msra.mxu0 %v3657_v7 }
  0xc1   :  { %3235 = vmatprep.mubr.msk.f32.mxu0 %vm3460_vm2, %v3459_v1  ;;  %3269 = vmatmul.mubr.f32.vlgmr.msra.gmra.mxu1 %v3643_v2  ;;  %v4124_v2 = vand.u32 4294901760, %v3760_v41 }
  0xc2   :  { %3282 = vmatprep.subr.mxu1 %v3459_v1  ;;  %3236 = vmatmul.mubr.f32.vlgmr.msra.gmra.mxu0 %v3661_v11  ;;  %v4125_v11 = vand.u32 4294901760, %v3765_v48 }
  0xc3   :  { %3249 = vmatprep.subr.mxu0 %v3459_v1  ;;  %3283 = vmatpush3.msra.mxu1 %v3628_v59  ;;  %v1229_v60 = vsub.f32 %v3760_v41, %v4124_v2  ;;  %v4127_v2 = vand.u32 4294901760, %v3775_v56  ;;  %v65_v59 = vld [vmem:[#allocation4 + $0x28] sm:$0xff] }
  0xc4   :  { %3250 = vmatpush3.msra.mxu0 %v3646_v3  ;;  %3284 = vmatprep.subr.mxu1 %v3459_v1  ;;  %v1235_v0 = vsub.f32 %v3765_v48, %v4125_v11  ;;  %v1241_v3 = vsub.f32 %v3770_v42, %v4126_v57  ;;  %v3815_v11 = vsel %vm1111_vm3, 1.0, %v3459_v1 }
  0xc5   :  { %3251 = vmatprep.subr.mxu0 %v3459_v1  ;;  %3285 = vmatpush3.msra.mxu1 %v3638_v63  ;;  %v1247_v63 = vsub.f32 %v3775_v56, %v4127_v2  ;;  %v1230_v55 = vand.u32 4294901760, %v1229_v60 }
  0xc6   :  { %3252 = vmatpush3.msra.mxu0 %v3655_v6  ;;  %3286 = vmatprep.subr.mxu1 %v3459_v1  ;;  %v1236_v57 = vand.u32 4294901760, %v1235_v0  ;;  %v62_v6 = vld [vmem:[#allocation4 + $0x10] sm:$0xff]  ;;  %v1242_v2 = vand.u32 4294901760, %v1241_v3  ;;  %v1116_v0 = vsel %vm1114_vm4, %v3815_v11, 0 }
  0xc7   :  { %3253 = vmatprep.subr.mxu0 %v3459_v1  ;;  %3287 = vmatpush3.msra.mxu1 %v3648_v4  ;;  %v1248_v60 = vand.u32 4294901760, %v1247_v63  ;;  %v3839_v63 = vsub.f32 %v1116_v0, %v1116_v0 }
  0xc8   :  { %3254 = vmatpush3.msra.mxu0 %v3667_v13  ;;  %3288 = vmatprep.subr.mxu1 %v3459_v1  ;;  %v3822_v13 = vand.u32 4294901760, %v65_v59 }
  0xc9   :  { %3255 = vmatprep.subr.mxu0 %v3459_v1  ;;  %3289 = vmatpush3.msra.mxu1 %v3657_v7  ;;  %v3831_v7 = vand.u32 4294901760, %v62_v6 }
  0xca   :  { %3290 = vmatprep.mubr.msk.f32.mxu1 %vm3460_vm2, %v3459_v1  ;;  %3256 = vmatpush3.msra.mxu0 %v3677_v18  ;;  %v3836_v3 = vsub.f32 %v65_v59, %v3822_v13 }
  0xcb   :  { %3257 = vmatprep.mubr.msk.f32.mxu0 %vm3460_vm2, %v3459_v1  ;;  %3291 = vmatmul.mubr.msk.f32.vlgmr.msra.gmra.mxu1 %vm75_vm0, %v3626_v58 }
  0xcc   :  { %1231 = vmatprep.subr.mxu1 %v1230_v55  ;;  %3258 = vmatmul.mubr.f32.vlgmr.msra.gmra.mxu0 %v3634_v62  ;;  %v3844_v62 = vsub.f32 %v62_v6, %v3831_v7  ;;  %v1717_v59 = vand.u32 4294901760, %v3836_v3  ;;  %v1189_v55 = vand.u32 4294901760, %v3839_v63 }
  0xcd   :  { %3271 = vmatprep.subr.mxu0 %v3459_v1  ;;  %1237 = vmatpush1.msra.mxu1 %v1236_v57 }
  0xce   :  { %3272 = vmatpush3.msra.mxu0 %v3664_v12  ;;  %1243 = vmatprep.subr.mxu1 %v1242_v2  ;;  %v1724_v6 = vand.u32 4294901760, %v3844_v62  ;;  %v1718_v57 = vsub.f32 %v3836_v3, %v1717_v59  ;;  %v1190_v2 = vsub.f32 %v3839_v63, %v1189_v55 }
  0xcf   :  { %3273 = vmatprep.subr.mxu0 %v3459_v1  ;;  %1249 = vmatpush1.msra.mxu1 %v1248_v60 }
  0xd0   :  { %1282 = vmatprep.mubr.f32.mxu1 %v3459_v1  ;;  %3274 = vmatpush3.msra.mxu0 %v3674_v17  ;;  %v1725_v60 = vsub.f32 %v3844_v62, %v1724_v6  ;;  %v1719_v0 = vand.u32 4294901760, %v1718_v57  ;;  %v4131_v57 = vand.u32 4294901760, %v3775_v56 }
  0xd1   :  { %3136 = vmatmul.mubr.msk.f32.vlgmr.msra.gmra.mxu1 %vm1114_vm4, %v3815_v11  ;;  %1400 = vmatprep.subr.mxu1 %v3743_v61 }
  0xd2   :  { %3275 = vmatprep.subr.mxu0 %v3459_v1  ;;  %1402 = vmatpush1.msra.mxu1 %v3747_v5 }
  0xd3   :  { %3276 = vmatpush3.msra.mxu0 %v3686_v36  ;;  %1404 = vmatprep.subr.mxu1 %v3751_v35 }
  0xd4   :  { %3277 = vmatprep.subr.mxu0 %v3459_v1  ;;  %1406 = vmatpush1.msra.mxu1 %v3755_v37 }
  0xd5   :  { %1439 = vmatprep.mubr.f32.mxu1 %v3459_v1  ;;  %3278 = vmatpush3.msra.mxu0 %v3695_v39 }
  0xd6   :  { %3279 = vmatprep.mubr.msk.f32.mxu0 %vm3460_vm2, %v3459_v1  ;;  %1443 = vmatmul.mubr.f32.vlgmr.msra.gmra.mxu1 %v1189_v55 }
  0xd7   :  { %1562 = vmatprep.subr.mxu1 %v3743_v61  ;;  %3280 = vmatmul.mubr.msk.f32.vlgmr.msra.gmra.mxu0 %vm75_vm0, %v3626_v58  ;;  %v1191_v58 = vand.u32 4294901760, %v1190_v2 }
  0xd8   :  { %1147 = vmatprep.subr.mxu0 %v3743_v61  ;;  %1564 = vmatpush1.msra.mxu1 %v3747_v5  ;;  %v1726_v61 = vand.u32 4294901760, %v1725_v60 }
  0xd9   :  { %1149 = vmatpush1.msra.mxu0 %v3747_v5  ;;  %1566 = vmatprep.subr.mxu1 %v3751_v35  ;;  %v4128_v5 = vand.u32 4294901760, %v3760_v41 }
  0xda   :  { %1151 = vmatprep.subr.mxu0 %v3751_v35  ;;  %1568 = vmatpush1.msra.mxu1 %v3755_v37  ;;  %v4129_v35 = vand.u32 4294901760, %v3765_v48 }
  0xdb   :  { %1601 = vmatprep.mubr.f32.mxu1 %v3459_v1  ;;  %1153 = vmatpush1.msra.mxu0 %v3755_v37  ;;  %v4130_v37 = vand.u32 4294901760, %v3770_v42 }
  0xdc   :  { %1186 = vmatprep.mubr.f32.mxu0 %v3459_v1  ;;  %3138 = vmatmul.mubr.msk.f32.vlgmr.msra.gmra.mxu1 %vm1114_vm4, %v3815_v11 }
  0xdd   :  { %3300 = vmatprep.subr.mxu1 %v3459_v1  ;;  %1192 = vmatmul.mubr.f32.vlgmr.msra.gmra.mxu0 %v1191_v58 }
  0xde   :  { %1320 = vmatprep.subr.mxu0 %v3760_v41  ;;  %3301 = vmatpush3.msra.mxu1 %v1719_v0  ;;  %v2071_v41 = vpop.permute.xlu1 %2070 }
  0xdf   :  { %1323 = vmatpush1.msra.mxu0 %v3765_v48  ;;  %3302 = vmatprep.subr.mxu1 %v3459_v1  ;;  %vm2072_vm5 = vcmp.eq.s32.totalorder %v3622_v54, %v2071_v41 }
  0xe0   :  { %1326 = vmatprep.subr.mxu0 %v3770_v42  ;;  %3303 = vmatpush3.msra.mxu1 %v1726_v61  ;;  %v3928_v42 = vsel %vm2072_vm5, 1.0, %v3459_v1 }
  0xe1   :  { %3304 = vmatprep.mubr.msk.f32.mxu1 %vm3460_vm2, %v3459_v1  ;;  %1329 = vmatpush1.msra.mxu0 %v3775_v56  ;;  %v2076_v54 = vsel %vm75_vm0, %v3928_v42, 0 }
  0xe2   :  { %1362 = vmatprep.mubr.f32.mxu0 %v3459_v1  ;;  %3305 = vmatmul.mubr.msk.f32.vlgmr.msra.gmra.mxu1 %vm1114_vm4, %v3815_v11 }
  0xe3   :  { %3314 = vmatprep.subr.mxu1 %v3459_v1  ;;  %1365 = vmatmul.mubr.f32.vlgmr.msra.gmra.mxu0 %v3839_v63 }
  0xe4   :  { %1480 = vmatprep.subr.mxu0 %v4128_v5  ;;  %3315 = vmatpush3.msra.mxu1 %v3822_v13 }
  0xe5   :  { %1484 = vmatpush1.msra.mxu0 %v4129_v35  ;;  %3316 = vmatprep.subr.mxu1 %v3459_v1 }
  0xe6   :  { %1488 = vmatprep.subr.mxu0 %v4130_v37  ;;  %3317 = vmatpush3.msra.mxu1 %v3831_v7 }
  0xe7   :  { %3318 = vmatprep.mubr.msk.f32.mxu1 %vm3460_vm2, %v3459_v1  ;;  %1492 = vmatpush1.msra.mxu0 %v4131_v57 }
  0xe8   :  { %1525 = vmatprep.mubr.f32.mxu0 %v3459_v1  ;;  %3319 = vmatmul.mubr.f32.vlgmr.msra.gmra.mxu1 %v1189_v55 }
  0xe9   :  { %3328 = vmatprep.subr.mxu1 %v3459_v1  ;;  %3137 = vmatmul.mubr.msk.f32.vlgmr.msra.gmra.mxu0 %vm1114_vm4, %v3815_v11 }
  0xea   :  { %3293 = vmatprep.subr.mxu0 %v3459_v1  ;;  %3329 = vmatpush3.msra.mxu1 %v3822_v13 }
  0xeb   :  { %3294 = vmatpush3.msra.mxu0 %v3822_v13  ;;  %3330 = vmatprep.subr.mxu1 %v3459_v1 }
  0xec   :  { %3295 = vmatprep.subr.mxu0 %v3459_v1  ;;  %3331 = vmatpush3.msra.mxu1 %v3831_v7 }
  0xed   :  { %3332 = vmatprep.mubr.msk.f32.mxu1 %vm3460_vm2, %v3459_v1  ;;  %3296 = vmatpush3.msra.mxu0 %v3831_v7 }
  0xee   :  { %3297 = vmatprep.mubr.msk.f32.mxu0 %vm3460_vm2, %v3459_v1  ;;  %3333 = vmatmul.mubr.msk.f32.vlgmr.msra.gmra.mxu1 %vm1114_vm4, %v3815_v11 }
  0xef   :  { %2191 = vmatprep.subr.mxu1 %v3590_v43  ;;  %3298 = vmatmul.mubr.f32.vlgmr.msra.gmra.mxu0 %v1191_v58  ;;  %v3942_v43 = vsub.f32 %v2076_v54, %v2076_v54 }
  0xf0   :  { %3307 = vmatprep.subr.mxu0 %v3459_v1  ;;  %2197 = vmatpush1.msra.mxu1 %v3592_v44 }
  0xf1   :  { %3308 = vmatpush3.msra.mxu0 %v3836_v3  ;;  %2203 = vmatprep.subr.mxu1 %v3594_v45  ;;  %v3957_v44 = vand.u32 4294901760, %v3942_v43 }
  0xf2   :  { %3309 = vmatprep.subr.mxu0 %v3459_v1  ;;  %2209 = vmatpush1.msra.mxu1 %v3599_v47 }
  0xf3   :  { %3310 = vmatpush3.msra.mxu0 %v3844_v62  ;;  %3311 = vmatprep.mubr.msk.f32.mxu0 %vm3460_vm2, %v3459_v1  ;;  %v2154_v45 = vsub.f32 %v3942_v43, %v3957_v44 }
  0xf4   :  { %2215 = vmatprep.subr.mxu1 %v3605_v49  ;;  %3312 = vmatmul.mubr.f32.vlgmr.msra.gmra.mxu0 %v3839_v63 }
  0xf5   :  { %3321 = vmatprep.subr.mxu0 %v3459_v1  ;;  %2221 = vmatpush1.msra.mxu1 %v3609_v50  ;;  %v3980_v47 = vand.u32 4294901760, %v2154_v45 }
  0xf6   :  { %3322 = vmatpush3.msra.mxu0 %v1717_v59  ;;  %2227 = vmatprep.subr.mxu1 %v3612_v51 }
  0xf7   :  { %3323 = vmatprep.subr.mxu0 %v3459_v1  ;;  %2233 = vmatpush1.msra.mxu1 %v3615_v52 }
  0xf8   :  { %2266 = vmatprep.mubr.f32.mxu1 %v3459_v1  ;;  %3324 = vmatpush3.msra.mxu0 %v1724_v6 }
  0xf9   :  { %3325 = vmatprep.mubr.msk.f32.mxu0 %vm3460_vm2, %v3459_v1  ;;  %3143 = vmatmul.mubr.msk.f32.vlgmr.msra.gmra.mxu1 %vm75_vm0, %v3928_v42 }
  0xfa   :  { %2388 = vmatprep.subr.mxu1 %v3508_v8  ;;  %3326 = vmatmul.mubr.msk.f32.vlgmr.msra.gmra.mxu0 %vm1114_vm4, %v3815_v11 }
  0xfb   :  { %2103 = vmatprep.subr.mxu0 %v3508_v8  ;;  %2390 = vmatpush1.msra.mxu1 %v3510_v9 }
  0xfc   :  { %2105 = vmatpush1.msra.mxu0 %v3510_v9  ;;  %2392 = vmatprep.subr.mxu1 %v3512_v10 }
  0xfd   :  { %2107 = vmatprep.subr.mxu0 %v3512_v10  ;;  %2394 = vmatpush1.msra.mxu1 %v3514_v14 }
  0xfe   :  { %2109 = vmatpush1.msra.mxu0 %v3514_v14  ;;  %2396 = vmatprep.subr.mxu1 %v3516_v15 }
  0xff   :  { %2111 = vmatprep.subr.mxu0 %v3516_v15  ;;  %2398 = vmatpush1.msra.mxu1 %v3518_v16 }
 0x100   :  { %2113 = vmatpush1.msra.mxu0 %v3518_v16  ;;  %2400 = vmatprep.subr.mxu1 %v3529_v22 }
 0x101   :  { %2115 = vmatprep.subr.mxu0 %v3529_v22  ;;  %2402 = vmatpush1.msra.mxu1 %v3541_v26 }
 0x102   :  { %2435 = vmatprep.mubr.f32.mxu1 %v3459_v1  ;;  %2117 = vmatpush1.msra.mxu0 %v3541_v26 }
 0x103   :  { %2150 = vmatprep.mubr.f32.mxu0 %v3459_v1  ;;  %2439 = vmatmul.mubr.f32.vlgmr.msra.gmra.mxu1 %v3957_v44 }
 0x104   :  { %2566 = vmatprep.subr.mxu1 %v3508_v8  ;;  %2156 = vmatmul.mubr.f32.vlgmr.msra.gmra.mxu0 %v3980_v47  ;;  %v4132_v8 = vld [vmem:[#allocation15_spill] sm:$0xff] }
 0x105   :  { %2300 = vmatprep.subr.mxu0 %v3521_v19  ;;  %2568 = vmatpush1.msra.mxu1 %v3510_v9  ;;  %v4133_v9 = vld [vmem:[#allocation8_spill] sm:$0xff] }
 0x106   :  { %2303 = vmatpush1.msra.mxu0 %v3524_v20  ;;  %2570 = vmatprep.subr.mxu1 %v3512_v10  ;;  %v4134_v10 = vld [vmem:[#allocation9_spill] sm:$0xff]  ;;  %v4138_v19 = vld [vmem:[#allocation12_spill] sm:$0xff]  ;;  %v4139_v20 = vld [vmem:[#allocation14_spill] sm:$0xff] }
 0x107   :  { %2306 = vmatprep.subr.mxu0 %v3527_v21  ;;  %2572 = vmatpush1.msra.mxu1 %v3514_v14  ;;  %v4135_v14 = vld [vmem:[#allocation10_spill] sm:$0xff] }
 0x108   :  { %2309 = vmatpush1.msra.mxu0 %v3533_v23  ;;  %2574 = vmatprep.subr.mxu1 %v3516_v15  ;;  %v4136_v15 = vld [vmem:[#allocation13_spill] sm:$0xff] }
 0x109   :  { %2312 = vmatprep.subr.mxu0 %v3536_v24  ;;  %2576 = vmatpush1.msra.mxu1 %v3518_v16  ;;  %v4137_v16 = vld [vmem:[#allocation11_spill] sm:$0xff] }
 0x10a   :  { %2315 = vmatpush1.msra.mxu0 %v3539_v25  ;;  %2578 = vmatprep.subr.mxu1 %v3529_v22 }
 0x10b   :  { %2318 = vmatprep.subr.mxu0 %v3554_v30  ;;  %2580 = vmatpush1.msra.mxu1 %v3541_v26 }
 0x10c   :  { %2613 = vmatprep.mubr.f32.mxu1 %v3459_v1  ;;  %2321 = vmatpush1.msra.mxu0 %v3567_v34 }
 0x10d   :  { %2354 = vmatprep.mubr.f32.mxu0 %v3459_v1  ;;  %3145 = vmatmul.mubr.msk.f32.vlgmr.msra.gmra.mxu1 %vm75_vm0, %v3928_v42 }
 0x10e   :  { %3346 = vmatprep.subr.mxu1 %v3459_v1  ;;  %2357 = vmatmul.mubr.f32.vlgmr.msra.gmra.mxu0 %v3942_v43 }
 0x10f   :  { %2472 = vmatprep.subr.mxu0 %v3545_v27  ;;  %3347 = vmatpush3.msra.mxu1 %v3701_v40 }
 0x110   :  { %2476 = vmatpush1.msra.mxu0 %v3548_v28  ;;  %3348 = vmatprep.subr.mxu1 %v3459_v1 }
 0x111   :  { %2480 = vmatprep.subr.mxu0 %v3551_v29  ;;  %3349 = vmatpush3.msra.mxu1 %v3710_v46 }
 0x112   :  { %2484 = vmatpush1.msra.mxu0 %v3558_v31  ;;  %3350 = vmatprep.subr.mxu1 %v3459_v1 }
 0x113   :  { %2488 = vmatprep.subr.mxu0 %v3561_v32  ;;  %3351 = vmatpush3.msra.mxu1 %v3718_v53 }
 0x114   :  { %2492 = vmatpush1.msra.mxu0 %v3564_v33  ;;  %3352 = vmatprep.subr.mxu1 %v3459_v1 }
 0x115   :  { %2496 = vmatprep.subr.mxu0 %v3577_v38  ;;  %3353 = vmatpush3.msra.mxu1 %v4132_v8 }
 0x116   :  { %3354 = vmatprep.mubr.msk.f32.mxu1 %vm3460_vm2, %v3459_v1  ;;  %2500 = vmatpush1.msra.mxu0 %v4133_v9 }
 0x117   :  { %2533 = vmatprep.mubr.f32.mxu0 %v3459_v1  ;;  %3355 = vmatmul.mubr.msk.f32.vlgmr.msra.gmra.mxu1 %vm75_vm0, %v3928_v42 }
 0x118   :  { %3368 = vmatprep.subr.mxu1 %v3459_v1  ;;  %3144 = vmatmul.mubr.msk.f32.vlgmr.msra.gmra.mxu0 %vm75_vm0, %v3928_v42 }
 0x119   :  { %3335 = vmatprep.subr.mxu0 %v3459_v1  ;;  %3369 = vmatpush3.msra.mxu1 %v4134_v10 }
 0x11a   :  { %3336 = vmatpush3.msra.mxu0 %v4134_v10  ;;  %3370 = vmatprep.subr.mxu1 %v3459_v1 }
 0x11b   :  { %3337 = vmatprep.subr.mxu0 %v3459_v1  ;;  %3371 = vmatpush3.msra.mxu1 %v4135_v14 }
 0x11c   :  { %3338 = vmatpush3.msra.mxu0 %v4135_v14  ;;  %3372 = vmatprep.subr.mxu1 %v3459_v1 }
 0x11d   :  { %3339 = vmatprep.subr.mxu0 %v3459_v1  ;;  %3373 = vmatpush3.msra.mxu1 %v3648_v4 }
 0x11e   :  { %3340 = vmatpush3.msra.mxu0 %v3648_v4  ;;  %3374 = vmatprep.subr.mxu1 %v3459_v1 }
 0x11f   :  { %3341 = vmatprep.subr.mxu0 %v3459_v1  ;;  %3375 = vmatpush3.msra.mxu1 %v4136_v15 }
 0x120   :  { %3376 = vmatprep.mubr.msk.f32.mxu1 %vm3460_vm2, %v3459_v1  ;;  %3342 = vmatpush3.msra.mxu0 %v4136_v15 }
 0x121   :  { %3343 = vmatprep.mubr.msk.f32.mxu0 %vm3460_vm2, %v3459_v1  ;;  %3377 = vmatmul.mubr.f32.vlgmr.msra.gmra.mxu1 %v3957_v44 }
 0x122   :  { %3390 = vmatprep.subr.mxu1 %v3459_v1  ;;  %3344 = vmatmul.mubr.f32.vlgmr.msra.gmra.mxu0 %v3980_v47 }
 0x123   :  { %3357 = vmatprep.subr.mxu0 %v3459_v1  ;;  %3391 = vmatpush3.msra.mxu1 %v4134_v10 }
 0x124   :  { %3358 = vmatpush3.msra.mxu0 %v4137_v16  ;;  %3392 = vmatprep.subr.mxu1 %v3459_v1 }
 0x125   :  { %3359 = vmatprep.subr.mxu0 %v3459_v1  ;;  %3393 = vmatpush3.msra.mxu1 %v4135_v14 }
 0x126   :  { %3360 = vmatpush3.msra.mxu0 %v4138_v19  ;;  %3394 = vmatprep.subr.mxu1 %v3459_v1 }
 0x127   :  { %3361 = vmatprep.subr.mxu0 %v3459_v1  ;;  %3395 = vmatpush3.msra.mxu1 %v3648_v4 }
 0x128   :  { %3362 = vmatpush3.msra.mxu0 %v4139_v20  ;;  %3396 = vmatprep.subr.mxu1 %v3459_v1 }
 0x129   :  { %3363 = vmatprep.subr.mxu0 %v3459_v1  ;;  %3397 = vmatpush3.msra.mxu1 %v4136_v15 }
 0x12a   :  { %3398 = vmatprep.mubr.msk.f32.mxu1 %vm3460_vm2, %v3459_v1  ;;  %3364 = vmatpush3.msra.mxu0 %v3677_v18 }
 0x12b   :  { %3365 = vmatprep.mubr.msk.f32.mxu0 %vm3460_vm2, %v3459_v1  ;;  %3399 = vmatmul.mubr.msk.f32.vlgmr.msra.gmra.mxu1 %vm75_vm0, %v3928_v42 }
 0x12c   :  { %3366 = vmatmul.mubr.f32.vlgmr.msra.gmra.mxu0 %v3942_v43  ;;  %3379 = vmatprep.subr.mxu0 %v3459_v1 }
 0x12d   :  { %3380 = vmatpush3.msra.mxu0 %v3664_v12  ;;  %3387 = vmatprep.mubr.msk.f32.mxu0 %vm3460_vm2, %v3459_v1 }
 0x12e   :  { %3381 = vmatprep.subr.mxu0 %v3459_v1 }
 0x12f   :  { %3382 = vmatpush3.msra.mxu0 %v3674_v17 }
 0x130   :  { %3383 = vmatprep.subr.mxu0 %v3459_v1 }
 0x131   :  { %3384 = vmatpush3.msra.mxu0 %v3686_v36 }
 0x132   :  { %3385 = vmatprep.subr.mxu0 %v3459_v1 }
 0x133   :  { %3386 = vmatpush3.msra.mxu0 %v3695_v39 }
 0x134   :  { %3388 = vmatmul.mubr.msk.f32.vlgmr.msra.gmra.mxu0 %vm75_vm0, %v3928_v42 }
 0x15c   :  { %v270_v21 = vpop.f32.mrf.mxu1 }
 0x15e   :  { %v272_v24 = vpop.f32.mrf.mxu1 }
 0x164   :  { %v441_v27 = vpop.f32.mrf.mxu1 }
 0x165   :  { %v158_v22 = vpop.f32.mrf.mxu0 }
 0x166   :  { %v271_v23 = vadd.f32 %v270_v21, %v158_v22  ;;  %v443_v29 = vpop.f32.mrf.mxu1 }
 0x167   :  { %v160_v25 = vpop.f32.mrf.mxu0 }
 0x168   :  { %v273_v26 = vadd.f32 %v272_v24, %v160_v25 }
 0x16d   :  { %v617_v32 = vpop.f32.mrf.mxu1 }
 0x16e   :  { %v359_v28 = vpop.f32.mrf.mxu0 }
 0x16f   :  { %v360_v30 = vadd.f32 %v359_v28, %v271_v23  ;;  %v619_v38 = vpop.f32.mrf.mxu1 }
 0x170   :  { %v361_v31 = vpop.f32.mrf.mxu0 }
 0x171   :  { %v362_v33 = vadd.f32 %v361_v31, %v273_v26  ;;  %v442_v34 = vadd.f32 %v441_v27, %v360_v30 }
 0x173   :  { %v444_v1 = vadd.f32 %v443_v29, %v362_v33 }
 0x177   :  { %v788_v49 = vpop.f32.mrf.mxu1 }
 0x178   :  { %v537_v50 = vpop.f32.mrf.mxu0 }
 0x179   :  { %v538_v51 = vadd.f32 %v537_v50, %v442_v34  ;;  %v3248_v52 = vpop.f32.mrf.mxu1 }
 0x17a   :  { %v539_v4 = vpop.f32.mrf.mxu0 }
 0x17b   :  { %v618_v7 = vadd.f32 %v617_v32, %v538_v51  ;;  %v540_v12 = vadd.f32 %v539_v4, %v444_v1 }
 0x17d   :  { %v4090_v13 = vadd.f32 %v619_v38, %v540_v12 }
 0x181   :  { %v945_v17 = vpop.f32.mrf.mxu1 }
 0x182   :  { %v697_v18 = vpop.f32.mrf.mxu0 }
 0x183   :  { %v789_v36 = vadd.f32 %v788_v49, %v697_v18  ;;  %v3270_v39 = vpop.f32.mrf.mxu1 }
 0x184   :  { %v3237_v40 = vpop.f32.mrf.mxu0 }
 0x18b   :  { %v1103_v46 = vpop.f32.mrf.mxu1 }
 0x18c   :  { %v868_v53 = vpop.f32.mrf.mxu0 }
 0x18d   :  { %v869_v48 = vadd.f32 %v868_v53, %v789_v36  ;;  %v3292_v56 = vpop.f32.mrf.mxu1 }
 0x18e   :  { %v3259_v11 = vpop.f32.mrf.mxu0 }
 0x18f   :  { %v946_v3 = vadd.f32 %v945_v17, %v869_v48 }
 0x191   :  { %v1285_v63 = vpop.f32.mrf.mxu1 }
 0x193   :  { %v1287_v62 = vpop.f32.mrf.mxu1 }
 0x196   :  { %v1444_v59 = vpop.f32.mrf.mxu1 }
 0x197   :  { %v1028_v55 = vpop.f32.mrf.mxu0 }
 0x198   :  { %v1029_v6 = vadd.f32 %v1028_v55, %v946_v3  ;;  %v1446_v2 = vpop.f32.mrf.mxu1 }
 0x199   :  { %v3281_v60 = vpop.f32.mrf.mxu0 }
 0x19a   :  { %v4092_v0 = vadd.f32 %v1103_v46, %v1029_v6 }
 0x19c   :  { %v1604_v58 = vpop.f32.mrf.mxu1 }
 0x19d   :  { %v1193_v61 = vpop.f32.mrf.mxu0 }
 0x19e   :  { %v1286_v5 = vadd.f32 %v1285_v63, %v1193_v61  ;;  %v1606_v35 = vpop.f32.mrf.mxu1 }
 0x19f   :  { %v1195_v37 = vpop.f32.mrf.mxu0 }
 0x1a0   :  { %v1288_v57 = vadd.f32 %v1287_v62, %v1195_v37 }
 0x1a2   :  { %v1763_v41 = vpop.f32.mrf.mxu1 }
 0x1a3   :  { %v1366_v42 = vpop.f32.mrf.mxu0 }
 0x1a4   :  { %v1367_v54 = vadd.f32 %v1366_v42, %v1286_v5  ;;  %v3306_v43 = vpop.f32.mrf.mxu1 }
 0x1a5   :  { %v1368_v44 = vpop.f32.mrf.mxu0 }
 0x1a6   :  { %v1369_v45 = vadd.f32 %v1368_v44, %v1288_v57  ;;  %v1445_v47 = vadd.f32 %v1444_v59, %v1367_v54 }
 0x1a8   :  { %v1914_v8 = vpop.f32.mrf.mxu1  ;;  %v1447_v9 = vadd.f32 %v1446_v2, %v1369_v45 }
 0x1a9   :  { %v1528_v10 = vpop.f32.mrf.mxu0 }
 0x1aa   :  { %v1529_v14 = vadd.f32 %v1528_v10, %v1445_v47  ;;  %v3320_v15 = vpop.f32.mrf.mxu1 }
 0x1ab   :  { %v1530_v16 = vpop.f32.mrf.mxu0 }
 0x1ac   :  { %v1605_v19 = vadd.f32 %v1604_v58, %v1529_v14  ;;  %v1531_v20 = vadd.f32 %v1530_v16, %v1447_v9 }
 0x1ae   :  { %v3106_v21 = vmul.f32 %v1605_v19, %v618_v7  ;;  %v1607_v22 = vadd.f32 %v1606_v35, %v1531_v20  ;;  %v2064_v23 = vpop.f32.mrf.mxu1 }
 0x1af   :  { %v1682_v24 = vpop.f32.mrf.mxu0 }
 0x1b0   :  { %v3334_v25 = vpop.f32.mrf.mxu1  ;;  %v1764_v27 = vadd.f32 %v1763_v41, %v1682_v24 }
 0x1b1   :  { %v3299_v26 = vpop.f32.mrf.mxu0 }
 0x1b4   :  { %v1839_v28 = vpop.f32.mrf.mxu0 }
 0x1b5   :  { %v1840_v29 = vadd.f32 %v1839_v28, %v1764_v27 }
 0x1b6   :  { %v3313_v30 = vpop.f32.mrf.mxu0 }
 0x1b7   :  { %v1915_v31 = vadd.f32 %v1914_v8, %v1840_v29 }
 0x1b9   :  { %v2269_v38 = vpop.f32.mrf.mxu1 }
 0x1ba   :  { %v1991_v32 = vpop.f32.mrf.mxu0 }
 0x1bb   :  { %v1992_v33 = vadd.f32 %v1991_v32, %v1915_v31  ;;  %v2271_v49 = vpop.f32.mrf.mxu1 }
 0x1bc   :  { %v3327_v34 = vpop.f32.mrf.mxu0 }
 0x1bd   :  { %v2065_v1 = vadd.f32 %v2064_v23, %v1992_v33 }
 0x1c3   :  { %v2440_v50 = vpop.f32.mrf.mxu1 }
 0x1c4   :  { %v2157_v52 = vpop.f32.mrf.mxu0 }
 0x1c5   :  { %v2442_v51 = vpop.f32.mrf.mxu1  ;;  %v2270_v59 = vadd.f32 %v2269_v38, %v2157_v52 }
 0x1c6   :  { %v2159_v7 = vpop.f32.mrf.mxu0 }
 0x1c7   :  { %v2272_v3 = vadd.f32 %v2271_v49, %v2159_v7 }
 0x1cd   :  { %v2616_v4 = vpop.f32.mrf.mxu1 }
 0x1ce   :  { %v2358_v17 = vpop.f32.mrf.mxu0 }
 0x1cf   :  { %v2618_v12 = vpop.f32.mrf.mxu1  ;;  %v2359_v60 = vadd.f32 %v2358_v17, %v2270_v59 }
 0x1d0   :  { %v2360_v39 = vpop.f32.mrf.mxu0 }
 0x1d1   :  { %v2361_v63 = vadd.f32 %v2360_v39, %v2272_v3  ;;  %v2441_v37 = vadd.f32 %v2440_v50, %v2359_v60 }
 0x1d3   :  { %v2443_v61 = vadd.f32 %v2442_v51, %v2361_v63 }
 0x1d7   :  { %v2787_v18 = vpop.f32.mrf.mxu1 }
 0x1d8   :  { %v2536_v40 = vpop.f32.mrf.mxu0 }
 0x1d9   :  { %v3356_v36 = vpop.f32.mrf.mxu1  ;;  %v2537_v41 = vadd.f32 %v2536_v40, %v2441_v37 }
 0x1da   :  { %v2538_v46 = vpop.f32.mrf.mxu0 }
 0x1db   :  { %v2539_v35 = vadd.f32 %v2538_v46, %v2443_v61  ;;  %v2617_v47 = vadd.f32 %v2616_v4, %v2537_v41 }
 0x1dd   :  { %v2619_v54 = vadd.f32 %v2618_v12, %v2539_v35  ;;  %v3107_v19 = vmul.f32 %v3106_v21, %v2617_v47 }
 0x1df   :  { %v3108_v8 = vmul.f32 %v2619_v54, %v1607_v22  ;;  %v3114_v9 = vmul.f32 %v2619_v54, %v2065_v1 }
 0x1e1   :  { %v2944_v53 = vpop.f32.mrf.mxu1 }
 0x1e2   :  { %v2696_v48 = vpop.f32.mrf.mxu0 }
 0x1e3   :  { %v3378_v56 = vpop.f32.mrf.mxu1  ;;  %v2788_v6 = vadd.f32 %v2787_v18, %v2696_v48 }
 0x1e4   :  { %v3345_v11 = vpop.f32.mrf.mxu0 }
 0x1eb   :  { %v3102_v62 = vpop.f32.mrf.mxu1 }
 0x1ec   :  { %v2867_v55 = vpop.f32.mrf.mxu0 }
 0x1ed   :  { %v3400_v2 = vpop.f32.mrf.mxu1  ;;  %v2868_v5 = vadd.f32 %v2867_v55, %v2788_v6 }
 0x1ee   :  { %v3367_v58 = vpop.f32.mrf.mxu0 }
 0x1ef   :  { %v2945_v57 = vadd.f32 %v2944_v53, %v2868_v5 }
 0x1f4   :  { %v3027_v42 = vpop.f32.mrf.mxu0 }
 0x1f5   :  { %v3028_v43 = vadd.f32 %v3027_v42, %v2945_v57 }
 0x1f6   :  { %v3389_v44 = vpop.f32.mrf.mxu0 }
 0x1f7   :  { %v3103_v45 = vadd.f32 %v3102_v62, %v3028_v43 }
 0x1f9   :  { %v3109_v10 = vmul.f32 %v3103_v45, %v2065_v1  ;;  %v3113_v14 = vmul.f32 %v3103_v45, %v1607_v22 }
 0x1fb   :  { %v3110_v15 = vadd.f32 %v3109_v10, %v3108_v8  ;;  %v3115_v16 = vsub.f32 %v3113_v14, %v3114_v9 }
 0x1fd   :  { %v3111_v20 = vmul.f32 %v3110_v15, %v4090_v13  ;;  %v3116_v23 = vmul.f32 %v3115_v16, %v4092_v0 }
 0x1ff   :  { %v3112_v24 = vadd.f32 %v3111_v20, %v3107_v19 }
 0x201   :  { %v3117_v25 = vadd.f32 %v3116_v23, %v3112_v24 }
 0x203   :  { %3118 = vadd.xlane.f32.xlu1 %v3117_v25 }
 0x28c   :  { %v3119_v26 = vpop.xlane.xlu1 %3118 }
 0x28d   :  { %3121 = vst.msk [vmem:[%s4104_s5] sm:$0xff] %vm3120_vm6, %v3119_v26 }
 0x28e   :  { %3126 = vsyncpa [#allocation3], 1 }
 0x28f   :  { %3127 = vsyncpa [#allocation5], 1 }

</bundles_post_ra>
